<compile_context>
chip_gen: v6e
topology: v6e:2x2x1
jax: 0.10.0
libtpu: 0.0.40
codegen_flags: <defaults>
</compile_context>

<pallas_src>
import numpy as np
import jax
import jax.numpy as jnp
from jax.experimental import pallas as pl
from jax.experimental.pallas import tpu as pltpu

Z_DIM = 16     # matches the module-level `z_dim` global used by sample_z
LANES = 128    # lane-dense width of the packed slabs


def _rup(n, m):
    return ((n + m - 1) // m) * m


# ----------------------------------------------------------------------------
# parameter packing: one lane-dense slab, 8-row x narrow-band cells (first-fit)
# ----------------------------------------------------------------------------
_PARAM_ORDER = ('e_w1', 'e_b1', 'e_w2', 'e_b2', 'e_w3', 'e_b3',
                'e_wm', 'e_bm', 'e_wl', 'e_bl',
                'd_w1x', 'd_w1z', 'd_b1', 'd_w2', 'd_b2', 'd_w3', 'd_b3',
                'd_w4', 'd_b4')


def pack_params(enc_params, dec_params, x_dim):
    w1, b1, w2, b2, w3, b3, wm, bm, wl, bl = enc_params
    d1, db1, d2, db2, d3, db3, d4, db4 = dec_params
    named = {
        # encoder W1 stays unsplit: the data slab packs x|y in adjacent columns
        'e_w1': w1, 'e_b1': b1, 'e_w2': w2, 'e_b2': b2,
        'e_w3': w3, 'e_b3': b3,
        'e_wm': wm, 'e_bm': bm, 'e_wl': wl, 'e_bl': bl,
        # decoder W1 split once at init (cat([x_t, z]) trick)
        'd_w1x': d1[:x_dim], 'd_w1z': d1[x_dim:], 'd_b1': db1,
        'd_w2': d2, 'd_b2': db2, 'd_w3': d3, 'd_b3': db3,
        'd_w4': d4, 'd_b4': db4,
    }
    named = {k: np.asarray(v, np.float32) for k, v in named.items()}

    # band width = smallest of {16,32,64,128} covering the widest param
    max_c = max(a.shape[1] for a in named.values())
    band = LANES
    for cand in (16, 32, 64):
        if max_c <= cand:
            band = cand
            break
    n_bands = LANES // band

    occ = []                                       # occ[group][band] -> taken

    def _ensure(g):
        while len(occ) <= g:
            occ.append([False] * n_bands)

    offs = {}
    order = sorted(_PARAM_ORDER, key=lambda k: -named[k].shape[0])  # tall first
    for name in order:
        r, c = named[name].shape
        gneed = _rup(r, 8) // 8
        g = 0
        while True:
            _ensure(g + gneed - 1)
            hit = next((b for b in range(n_bands)
                        if all(not occ[g + i][b] for i in range(gneed))), None)
            if hit is not None:
                for i in range(gneed):
                    occ[g + i][hit] = True
                offs[name] = (g * 8, hit * band, r, c)
                break
            g += 1

    slab = np.zeros((len(occ) * 8, LANES), np.float32)
    for name, (ro, co, r, c) in offs.items():
        slab[ro:ro + r, co:co + c] = named[name]
    return jnp.asarray(slab), offs


# ----------------------------------------------------------------------------
# data-slab layout (all offsets static Python ints, 8-row aligned blocks)
# ----------------------------------------------------------------------------
def _data_layout(n_t, n_c, n_ct, x_dim, y_dim, z_dim):
    n_enc = n_ct + n_c
    lay = {'n_enc': n_enc, 'enc': 0}          # rows [0,n_enc): cols (x | y)
    r = _rup(n_enc, 8)
    lay['sel'] = r                             # 2 selector rows, cols 0:n_enc
    lay['eps'] = r + 2                         # 1 eps row, cols 0:z_dim
    r += 8
    lay['xt'] = r                              # rows [r, r+n_t): x_t
    r += _rup(n_t, 8)
    lay['rows'] = r
    return lay


# ----------------------------------------------------------------------------
# fused Pallas kernel
# ----------------------------------------------------------------------------
def _make_fused_kernel(poffs, lay, n_t, x_dim, y_dim, r_dim, z_dim, y_row0):
    n_enc = lay['n_enc']

    def kernel(d_ref, p_ref, out_ref):
        def W(name):
            ro, co, k, n = poffs[name]                 # static -> cheap view
            return p_ref[ro:ro + k, co:co + n]

        def dot(a, b):
            return jnp.dot(a, b, preferred_element_type=jnp.float32)

        sig = jax.nn.sigmoid

        # --- REncoder once over the stacked (all-points ; context) rows
        xy = d_ref[0:n_enc, 0:x_dim + y_dim]                      # (N, x+y)
        h1 = sig(dot(xy, W('e_w1')) + W('e_b1'))
        h2 = sig(dot(h1, W('e_w2')) + W('e_b2'))
        rs = dot(h2, W('e_w3')) + W('e_b3')                       # (N, r)

        # --- segment means via selector matmul (true-count 1/n entries)
        sel = d_ref[lay['sel']:lay['sel'] + 2, 0:n_enc]           # (2, N)
        r_agg = dot(sel, rs)                                      # (2, r)

        # --- ZEncoder heads for both segments at once: rows = (all, ctx)
        mu2 = dot(r_agg, W('e_wm')) + W('e_bm')                   # (2, z)
        lv2 = dot(r_agg, W('e_wl')) + W('e_bl')                   # (2, z)

        # --- sample_z (reparameterisation) from the all-points stats
        eps = d_ref[lay['eps']:lay['eps'] + 1, 0:z_dim]           # (1, z)
        mu_all = mu2[0:1, :]
        lv_all = lv2[0:1, :]
        std = 0.1 + 0.9 * sig(lv_all)
        zs = mu_all + std * eps                                   # (1, z)

        # --- Decoder: cat([x_t, z]) @ W1 == x_t @ W1x + zs @ W1z
        xt = d_ref[lay['xt']:lay['xt'] + n_t, 0:x_dim]
        g1 = sig(dot(xt, W('d_w1x')) + dot(zs, W('d_w1z')) + W('d_b1'))
        g2 = sig(dot(g1, W('d_w2')) + W('d_b2'))
        g3 = sig(dot(g2, W('d_w3')) + W('d_b3'))
        y = dot(g3, W('d_w4')) + W('d_b4')                        # (n_t, y)

        # --- single lane-dense merged output buffer
        out_ref[...] = jnp.zeros_like(out_ref)
        out_ref[0:2, 0:z_dim] = mu2                               # mu_all, mu_ctx
        out_ref[2:4, 0:z_dim] = lv2                               # lv_all, lv_ctx
        out_ref[y_row0:y_row0 + n_t, 0:y_dim] = y

    return kernel


# ----------------------------------------------------------------------------
# cost hint (advisory only)
# ----------------------------------------------------------------------------
def _cost(n_t, n_enc, x_dim, y_dim, r_dim, z_dim):
    enc = 2 * n_enc * ((x_dim + y_dim) * 4 + 4 * 4 + 4 * r_dim)
    enc += 2 * 2 * n_enc * r_dim                    # selector matmul
    enc += 2 * 2 * 2 * r_dim * z_dim                # mu/logvar heads (2 rows)
    dec = 2 * (n_t * x_dim * 8 + z_dim * 8 + 2 * n_t * 8 * 8 + n_t * 8 * y_dim)
    trans = n_enc * 8 + z_dim + n_t * 24
    return int(enc + dec), int(trans)


# ----------------------------------------------------------------------------
# pallas_call wrapper (mirrors DCRNNModel.forward)
# ----------------------------------------------------------------------------
def dcrnn_forward(slab, poffs, dims, x_t, x_c, y_c, x_ct, y_ct, eps):
    """Returns (y_pred, (mu_all, logvar_all, mu_ctx, logvar_ctx))."""
    x_dim, y_dim, r_dim, z_dim = dims
    n_t, n_c, n_ct = x_t.shape[0], x_c.shape[0], x_ct.shape[0]
    lay = _data_layout(n_t, n_c, n_ct, x_dim, y_dim, z_dim)
    n_enc = lay['n_enc']

    # selector with TRUE per-segment counts so padding never biases the mean
    sel = np.zeros((2, n_enc), np.float32)
    sel[0, :n_ct] = 1.0 / n_ct       # row 0: mean over all points (x_ct,y_ct)
    sel[1, n_ct:] = 1.0 / n_c        # row 1: mean over context (x_c,y_c)

    # pack the six data inputs into ONE lane-dense slab -> one input DMA
    d = jnp.zeros((lay['rows'], LANES), jnp.float32)
    d = d.at[0:n_ct, 0:x_dim].set(x_ct)
    d = d.at[0:n_ct, x_dim:x_dim + y_dim].set(y_ct)
    d = d.at[n_ct:n_enc, 0:x_dim].set(x_c)
    d = d.at[n_ct:n_enc, x_dim:x_dim + y_dim].set(y_c)
    d = d.at[lay['sel']:lay['sel'] + 2, 0:n_enc].set(jnp.asarray(sel))
    d = d.at[lay['eps']:lay['eps'] + 1, 0:z_dim].set(eps)
    d = d.at[lay['xt']:lay['xt'] + n_t, 0:x_dim].set(x_t)

    y_row0 = 8
    out_rows = y_row0 + _rup(n_t, 8)
    kernel = _make_fused_kernel(poffs, lay, n_t, x_dim, y_dim, r_dim, z_dim,
                                y_row0)

    flops, trans = _cost(n_t, n_enc, x_dim, y_dim, r_dim, z_dim)
    bytes_accessed = 4 * int(d.size + slab.size + out_rows * LANES)

    out = pl.pallas_call(
        kernel,
        out_shape=jax.ShapeDtypeStruct((out_rows, LANES), jnp.float32),
        in_specs=[pl.BlockSpec(memory_space=pltpu.MemorySpace.VMEM),
                  pl.BlockSpec(memory_space=pltpu.MemorySpace.VMEM)],
        out_specs=pl.BlockSpec(memory_space=pltpu.MemorySpace.VMEM),
        cost_estimate=pl.CostEstimate(flops=flops, transcendentals=trans,
                                      bytes_accessed=bytes_accessed),
    )(d, slab)

    mu_all, mu_ctx = out[0:1, 0:z_dim], out[1:2, 0:z_dim]
    lv_all, lv_ctx = out[2:3, 0:z_dim], out[3:4, 0:z_dim]
    y = out[y_row0:y_row0 + n_t, 0:y_dim]
    return y, (mu_all, lv_all, mu_ctx, lv_ctx)


# ----------------------------------------------------------------------------
# deterministic parameter init (weights ~ N(0,1) like torch.nn.init.normal_,
# biases ~ U(-1/sqrt(fan_in), 1/sqrt(fan_in)) like torch Linear default)
# ----------------------------------------------------------------------------
def _linear(key, in_d, out_d):
    kw, kb = jax.random.split(key)
    w = jax.random.normal(kw, (in_d, out_d), dtype=jnp.float32)  # == torch W.T
    bound = 1.0 / (in_d ** 0.5)
    b = jax.random.uniform(kb, (1, out_d), jnp.float32, -bound, bound)
    return w, b


def init_params(key, x_dim, y_dim, r_dim, z_dim):
    ks = jax.random.split(key, 9)
    # REncoder: (x+y) -> 4 -> 4 -> r_dim
    w1, b1 = _linear(ks[0], x_dim + y_dim, 4)
    w2, b2 = _linear(ks[1], 4, 4)
    w3, b3 = _linear(ks[2], 4, r_dim)
    # ZEncoder: r_dim -> z_dim (mu and logvar heads)
    wm, bm = _linear(ks[3], r_dim, z_dim)
    wl, bl = _linear(ks[4], r_dim, z_dim)
    enc_params = (w1, b1, w2, b2, w3, b3, wm, bm, wl, bl)
    # Decoder: (x+z) -> 8 -> 8 -> 8 -> y_dim
    d1, db1 = _linear(ks[5], x_dim + z_dim, 8)
    d2, db2 = _linear(ks[6], 8, 8)
    d3, db3 = _linear(ks[7], 8, 8)
    d4, db4 = _linear(ks[8], 8, y_dim)
    dec_params = (d1, db1, d2, db2, d3, db3, d4, db4)
    return enc_params, dec_params


# ----------------------------------------------------------------------------
# pure-JAX reference (correctness check of the fused Pallas kernel)
# ----------------------------------------------------------------------------
def ref_forward(enc_params, dec_params, x_t, x_c, y_c, x_ct, y_ct, eps):
    w1, b1, w2, b2, w3, b3, wm, bm, wl, bl = enc_params

    def enc(xy):
        h1 = jax.nn.sigmoid(xy @ w1 + b1)
        h2 = jax.nn.sigmoid(h1 @ w2 + b2)
        rs = h2 @ w3 + b3
        r = rs.mean(axis=0, keepdims=True)
        return r @ wm + bm, r @ wl + bl

    mu_all, lv_all = enc(jnp.concatenate([x_ct, y_ct], axis=1))
    mu_ctx, lv_ctx = enc(jnp.concatenate([x_c, y_c], axis=1))
    std = 0.1 + 0.9 * jax.nn.sigmoid(lv_all)
    zs = mu_all + std * eps
    d1, db1, d2, db2, d3, db3, d4, db4 = dec_params
    xz = jnp.concatenate(
        [x_t, jnp.broadcast_to(zs, (x_t.shape[0], zs.shape[1]))], axis=1)
    h1 = jax.nn.sigmoid(xz @ d1 + db1)
    h2 = jax.nn.sigmoid(h1 @ d2 + db2)
    h3 = jax.nn.sigmoid(h2 @ d3 + db3)
    return h3 @ d4 + db4, (mu_all, lv_all, mu_ctx, lv_ctx)


# ----------------------------------------------------------------------------
if __name__ == "__main__":
    x_dim, y_dim, r_dim, z_dim = 4, 2, 8, Z_DIM
    n_t, n_c, n_ct = 16, 8, 12
    dims = (x_dim, y_dim, r_dim, z_dim)

    key = jax.random.PRNGKey(0)
    kp, k1, k2, k3, k4, k5, k6 = jax.random.split(key, 7)

    enc_params, dec_params = init_params(kp, x_dim, y_dim, r_dim, z_dim)
    slab, poffs = pack_params(enc_params, dec_params, x_dim)

    x_t = jax.random.normal(k1, (n_t, x_dim), jnp.float32)
    x_c = jax.random.normal(k2, (n_c, x_dim), jnp.float32)
    y_c = jax.random.normal(k3, (n_c, y_dim), jnp.float32)
    x_ct = jax.random.normal(k4, (n_ct, x_dim), jnp.float32)
    y_ct = jax.random.normal(k5, (n_ct, y_dim), jnp.float32)
    eps = jax.random.normal(k6, (1, z_dim), jnp.float32)   # sample_z noise

    fwd = jax.jit(lambda s, *arrs: dcrnn_forward(s, poffs, dims, *arrs))
    y, state = fwd(slab, x_t, x_c, y_c, x_ct, y_ct, eps)
    y = jax.block_until_ready(y)

    y_ref, state_ref = ref_forward(enc_params, dec_params,
                                   x_t, x_c, y_c, x_ct, y_ct, eps)
    assert y.shape == (n_t, y_dim)
    assert jnp.allclose(y, y_ref, atol=1e-5, rtol=1e-5), "y mismatch vs ref"
    for got, want in zip(state, state_ref):
        assert jnp.allclose(got, want, atol=1e-5, rtol=1e-5), "state mismatch"

    print("KERNEL_OK")
</pallas_src>

<mosaic_0001>
module attributes {stable_mosaic.version = 11 : i64} {
  func.func @kernel(%arg0: memref<48x128xf32, #tpu.memory_space<vmem>>, %arg1: memref<24x128xf32, #tpu.memory_space<vmem>>, %arg2: memref<24x128xf32, #tpu.memory_space<vmem>>) attributes {dimension_semantics = [], scalar_prefetch = 0 : i64, scratch_operands = 0 : i64, tpu.core_type = #tpu.core_type<tc>} {
    %c0 = arith.constant 0 : index
    %c0_0 = arith.constant 0 : index
    %0 = vector.load %arg0[%c0, %c0_0] : memref<48x128xf32, #tpu.memory_space<vmem>>, vector<20x6xf32>
    %c0_1 = arith.constant 0 : index
    %c96 = arith.constant 96 : index
    %1 = vector.load %arg1[%c0_1, %c96] : memref<24x128xf32, #tpu.memory_space<vmem>>, vector<6x4xf32>
    %cst = arith.constant dense<0.000000e+00> : vector<20x4xf32>
    %2 = tpu.matmul %0, %1, %cst {dimension_numbers = #tpu.dot_dimension_numbers<[1], [0], [0], [1], [0, 0, 1, 1], [], []>} : vector<20x6xf32>, vector<6x4xf32>, vector<20x4xf32> -> vector<20x4xf32>
    %c8 = arith.constant 8 : index
    %c48 = arith.constant 48 : index
    %3 = vector.load %arg1[%c8, %c48] : memref<24x128xf32, #tpu.memory_space<vmem>>, vector<1x4xf32>
    %4 = vector.broadcast %3 : vector<1x4xf32> to vector<20x4xf32>
    %5 = arith.addf %2, %4 : vector<20x4xf32>
    %6 = arith.negf %5 : vector<20x4xf32>
    %7 = math.exp %6 : vector<20x4xf32>
    %cst_2 = arith.constant 1.000000e+00 : f32
    %8 = vector.broadcast %cst_2 : f32 to vector<20x4xf32>
    %9 = arith.addf %8, %7 : vector<20x4xf32>
    %10 = arith.divf %8, %9 : vector<20x4xf32>
    %c0_3 = arith.constant 0 : index
    %c112 = arith.constant 112 : index
    %11 = vector.load %arg1[%c0_3, %c112] : memref<24x128xf32, #tpu.memory_space<vmem>>, vector<4x4xf32>
    %cst_4 = arith.constant dense<0.000000e+00> : vector<20x4xf32>
    %12 = tpu.matmul %10, %11, %cst_4 {dimension_numbers = #tpu.dot_dimension_numbers<[1], [0], [0], [1], [0, 0, 1, 1], [], []>} : vector<20x4xf32>, vector<4x4xf32>, vector<20x4xf32> -> vector<20x4xf32>
    %c8_5 = arith.constant 8 : index
    %c64 = arith.constant 64 : index
    %13 = vector.load %arg1[%c8_5, %c64] : memref<24x128xf32, #tpu.memory_space<vmem>>, vector<1x4xf32>
    %14 = vector.broadcast %13 : vector<1x4xf32> to vector<20x4xf32>
    %15 = arith.addf %12, %14 : vector<20x4xf32>
    %16 = arith.negf %15 : vector<20x4xf32>
    %17 = math.exp %16 : vector<20x4xf32>
    %cst_6 = arith.constant 1.000000e+00 : f32
    %18 = vector.broadcast %cst_6 : f32 to vector<20x4xf32>
    %19 = arith.addf %18, %17 : vector<20x4xf32>
    %20 = arith.divf %18, %19 : vector<20x4xf32>
    %c8_7 = arith.constant 8 : index
    %c16 = arith.constant 16 : index
    %21 = vector.load %arg1[%c8_7, %c16] : memref<24x128xf32, #tpu.memory_space<vmem>>, vector<4x8xf32>
    %cst_8 = arith.constant dense<0.000000e+00> : vector<20x8xf32>
    %22 = tpu.matmul %20, %21, %cst_8 {dimension_numbers = #tpu.dot_dimension_numbers<[1], [0], [0], [1], [0, 0, 1, 1], [], []>} : vector<20x4xf32>, vector<4x8xf32>, vector<20x8xf32> -> vector<20x8xf32>
    %c8_9 = arith.constant 8 : index
    %c80 = arith.constant 80 : index
    %23 = vector.load %arg1[%c8_9, %c80] : memref<24x128xf32, #tpu.memory_space<vmem>>, vector<1x8xf32>
    %24 = vector.broadcast %23 : vector<1x8xf32> to vector<20x8xf32>
    %25 = arith.addf %22, %24 : vector<20x8xf32>
    %c24 = arith.constant 24 : index
    %c0_10 = arith.constant 0 : index
    %26 = vector.load %arg0[%c24, %c0_10] : memref<48x128xf32, #tpu.memory_space<vmem>>, vector<2x20xf32>
    %cst_11 = arith.constant dense<0.000000e+00> : vector<2x8xf32>
    %27 = tpu.matmul %26, %25, %cst_11 {dimension_numbers = #tpu.dot_dimension_numbers<[1], [0], [0], [1], [0, 0, 1, 1], [], []>} : vector<2x20xf32>, vector<20x8xf32>, vector<2x8xf32> -> vector<2x8xf32>
    %c0_12 = arith.constant 0 : index
    %c16_13 = arith.constant 16 : index
    %28 = vector.load %arg1[%c0_12, %c16_13] : memref<24x128xf32, #tpu.memory_space<vmem>>, vector<8x16xf32>
    %cst_14 = arith.constant dense<0.000000e+00> : vector<2x16xf32>
    %29 = tpu.matmul %27, %28, %cst_14 {dimension_numbers = #tpu.dot_dimension_numbers<[1], [0], [0], [1], [0, 0, 1, 1], [], []>} : vector<2x8xf32>, vector<8x16xf32>, vector<2x16xf32> -> vector<2x16xf32>
    %c8_15 = arith.constant 8 : index
    %c96_16 = arith.constant 96 : index
    %30 = vector.load %arg1[%c8_15, %c96_16] : memref<24x128xf32, #tpu.memory_space<vmem>>, vector<1x16xf32>
    %31 = vector.broadcast %30 : vector<1x16xf32> to vector<2x16xf32>
    %32 = arith.addf %29, %31 : vector<2x16xf32>
    %c0_17 = arith.constant 0 : index
    %c32 = arith.constant 32 : index
    %33 = vector.load %arg1[%c0_17, %c32] : memref<24x128xf32, #tpu.memory_space<vmem>>, vector<8x16xf32>
    %cst_18 = arith.constant dense<0.000000e+00> : vector<2x16xf32>
    %34 = tpu.matmul %27, %33, %cst_18 {dimension_numbers = #tpu.dot_dimension_numbers<[1], [0], [0], [1], [0, 0, 1, 1], [], []>} : vector<2x8xf32>, vector<8x16xf32>, vector<2x16xf32> -> vector<2x16xf32>
    %c8_19 = arith.constant 8 : index
    %c112_20 = arith.constant 112 : index
    %35 = vector.load %arg1[%c8_19, %c112_20] : memref<24x128xf32, #tpu.memory_space<vmem>>, vector<1x16xf32>
    %36 = vector.broadcast %35 : vector<1x16xf32> to vector<2x16xf32>
    %37 = arith.addf %34, %36 : vector<2x16xf32>
    %c26 = arith.constant 26 : index
    %c0_21 = arith.constant 0 : index
    %38 = vector.load %arg0[%c26, %c0_21] : memref<48x128xf32, #tpu.memory_space<vmem>>, vector<1x16xf32>
    %39 = vector.extract_strided_slice %32 {offsets = [0, 0], sizes = [1, 16], strides = [1, 1]} : vector<2x16xf32> to vector<1x16xf32>
    %40 = vector.extract_strided_slice %37 {offsets = [0, 0], sizes = [1, 16], strides = [1, 1]} : vector<2x16xf32> to vector<1x16xf32>
    %41 = arith.negf %40 : vector<1x16xf32>
    %42 = math.exp %41 : vector<1x16xf32>
    %cst_22 = arith.constant 1.000000e+00 : f32
    %43 = vector.broadcast %cst_22 : f32 to vector<1x16xf32>
    %44 = arith.addf %43, %42 : vector<1x16xf32>
    %45 = arith.divf %43, %44 : vector<1x16xf32>
    %cst_23 = arith.constant 0.899999976 : f32
    %46 = vector.broadcast %cst_23 : f32 to vector<1x16xf32>
    %47 = arith.mulf %46, %45 : vector<1x16xf32>
    %cst_24 = arith.constant 1.000000e-01 : f32
    %48 = vector.broadcast %cst_24 : f32 to vector<1x16xf32>
    %49 = arith.addf %48, %47 : vector<1x16xf32>
    %50 = arith.mulf %49, %38 : vector<1x16xf32>
    %51 = arith.addf %39, %50 : vector<1x16xf32>
    %c32_25 = arith.constant 32 : index
    %c0_26 = arith.constant 0 : index
    %52 = vector.load %arg0[%c32_25, %c0_26] : memref<48x128xf32, #tpu.memory_space<vmem>>, vector<16x4xf32>
    %c8_27 = arith.constant 8 : index
    %c32_28 = arith.constant 32 : index
    %53 = vector.load %arg1[%c8_27, %c32_28] : memref<24x128xf32, #tpu.memory_space<vmem>>, vector<4x8xf32>
    %cst_29 = arith.constant dense<0.000000e+00> : vector<16x8xf32>
    %54 = tpu.matmul %52, %53, %cst_29 {dimension_numbers = #tpu.dot_dimension_numbers<[1], [0], [0], [1], [0, 0, 1, 1], [], []>} : vector<16x4xf32>, vector<4x8xf32>, vector<16x8xf32> -> vector<16x8xf32>
    %c0_30 = arith.constant 0 : index
    %c0_31 = arith.constant 0 : index
    %55 = vector.load %arg1[%c0_30, %c0_31] : memref<24x128xf32, #tpu.memory_space<vmem>>, vector<16x8xf32>
    %cst_32 = arith.constant dense<0.000000e+00> : vector<1x8xf32>
    %56 = tpu.matmul %51, %55, %cst_32 {dimension_numbers = #tpu.dot_dimension_numbers<[1], [0], [0], [1], [0, 0, 1, 1], [], []>} : vector<1x16xf32>, vector<16x8xf32>, vector<1x8xf32> -> vector<1x8xf32>
    %57 = vector.broadcast %56 : vector<1x8xf32> to vector<16x8xf32>
    %58 = arith.addf %54, %57 : vector<16x8xf32>
    %c16_33 = arith.constant 16 : index
    %c0_34 = arith.constant 0 : index
    %59 = vector.load %arg1[%c16_33, %c0_34] : memref<24x128xf32, #tpu.memory_space<vmem>>, vector<1x8xf32>
    %60 = vector.broadcast %59 : vector<1x8xf32> to vector<16x8xf32>
    %61 = arith.addf %58, %60 : vector<16x8xf32>
    %62 = arith.negf %61 : vector<16x8xf32>
    %63 = math.exp %62 : vector<16x8xf32>
    %cst_35 = arith.constant 1.000000e+00 : f32
    %64 = vector.broadcast %cst_35 : f32 to vector<16x8xf32>
    %65 = arith.addf %64, %63 : vector<16x8xf32>
    %66 = arith.divf %64, %65 : vector<16x8xf32>
    %c0_36 = arith.constant 0 : index
    %c48_37 = arith.constant 48 : index
    %67 = vector.load %arg1[%c0_36, %c48_37] : memref<24x128xf32, #tpu.memory_space<vmem>>, vector<8x8xf32>
    %cst_38 = arith.constant dense<0.000000e+00> : vector<16x8xf32>
    %68 = tpu.matmul %66, %67, %cst_38 {dimension_numbers = #tpu.dot_dimension_numbers<[1], [0], [0], [1], [0, 0, 1, 1], [], []>} : vector<16x8xf32>, vector<8x8xf32>, vector<16x8xf32> -> vector<16x8xf32>
    %c16_39 = arith.constant 16 : index
    %c16_40 = arith.constant 16 : index
    %69 = vector.load %arg1[%c16_39, %c16_40] : memref<24x128xf32, #tpu.memory_space<vmem>>, vector<1x8xf32>
    %70 = vector.broadcast %69 : vector<1x8xf32> to vector<16x8xf32>
    %71 = arith.addf %68, %70 : vector<16x8xf32>
    %72 = arith.negf %71 : vector<16x8xf32>
    %73 = math.exp %72 : vector<16x8xf32>
    %cst_41 = arith.constant 1.000000e+00 : f32
    %74 = vector.broadcast %cst_41 : f32 to vector<16x8xf32>
    %75 = arith.addf %74, %73 : vector<16x8xf32>
    %76 = arith.divf %74, %75 : vector<16x8xf32>
    %c0_42 = arith.constant 0 : index
    %c64_43 = arith.constant 64 : index
    %77 = vector.load %arg1[%c0_42, %c64_43] : memref<24x128xf32, #tpu.memory_space<vmem>>, vector<8x8xf32>
    %cst_44 = arith.constant dense<0.000000e+00> : vector<16x8xf32>
    %78 = tpu.matmul %76, %77, %cst_44 {dimension_numbers = #tpu.dot_dimension_numbers<[1], [0], [0], [1], [0, 0, 1, 1], [], []>} : vector<16x8xf32>, vector<8x8xf32>, vector<16x8xf32> -> vector<16x8xf32>
    %c16_45 = arith.constant 16 : index
    %c32_46 = arith.constant 32 : index
    %79 = vector.load %arg1[%c16_45, %c32_46] : memref<24x128xf32, #tpu.memory_space<vmem>>, vector<1x8xf32>
    %80 = vector.broadcast %79 : vector<1x8xf32> to vector<16x8xf32>
    %81 = arith.addf %78, %80 : vector<16x8xf32>
    %82 = arith.negf %81 : vector<16x8xf32>
    %83 = math.exp %82 : vector<16x8xf32>
    %cst_47 = arith.constant 1.000000e+00 : f32
    %84 = vector.broadcast %cst_47 : f32 to vector<16x8xf32>
    %85 = arith.addf %84, %83 : vector<16x8xf32>
    %86 = arith.divf %84, %85 : vector<16x8xf32>
    %c0_48 = arith.constant 0 : index
    %c80_49 = arith.constant 80 : index
    %87 = vector.load %arg1[%c0_48, %c80_49] : memref<24x128xf32, #tpu.memory_space<vmem>>, vector<8x2xf32>
    %cst_50 = arith.constant dense<0.000000e+00> : vector<16x2xf32>
    %88 = tpu.matmul %86, %87, %cst_50 {dimension_numbers = #tpu.dot_dimension_numbers<[1], [0], [0], [1], [0, 0, 1, 1], [], []>} : vector<16x8xf32>, vector<8x2xf32>, vector<16x2xf32> -> vector<16x2xf32>
    %c16_51 = arith.constant 16 : index
    %c48_52 = arith.constant 48 : index
    %89 = vector.load %arg1[%c16_51, %c48_52] : memref<24x128xf32, #tpu.memory_space<vmem>>, vector<1x2xf32>
    %90 = vector.broadcast %89 : vector<1x2xf32> to vector<16x2xf32>
    %91 = arith.addf %88, %90 : vector<16x2xf32>
    %cst_53 = arith.constant 0.000000e+00 : f32
    %92 = vector.broadcast %cst_53 : f32 to vector<24x128xf32>
    %c0_54 = arith.constant 0 : index
    %c0_55 = arith.constant 0 : index
    %93 = vector.load %arg2[%c0_54, %c0_55] : memref<24x128xf32, #tpu.memory_space<vmem>>, vector<24x128xf32>
    tpu.vector_store %arg2[%c0_54, %c0_55], %92 {strides = array<i32>} : memref<24x128xf32, #tpu.memory_space<vmem>>, vector<24x128xf32>,
    %c0_56 = arith.constant 0 : index
    %c0_57 = arith.constant 0 : index
    %94 = vector.load %arg2[%c0_56, %c0_57] : memref<24x128xf32, #tpu.memory_space<vmem>>, vector<2x16xf32>
    tpu.vector_store %arg2[%c0_56, %c0_57], %32 {strides = array<i32>} : memref<24x128xf32, #tpu.memory_space<vmem>>, vector<2x16xf32>,
    %c2 = arith.constant 2 : index
    %c0_58 = arith.constant 0 : index
    %95 = vector.load %arg2[%c2, %c0_58] : memref<24x128xf32, #tpu.memory_space<vmem>>, vector<2x16xf32>
    tpu.vector_store %arg2[%c2, %c0_58], %37 {strides = array<i32>} : memref<24x128xf32, #tpu.memory_space<vmem>>, vector<2x16xf32>,
    %c8_59 = arith.constant 8 : index
    %c0_60 = arith.constant 0 : index
    %96 = vector.load %arg2[%c8_59, %c0_60] : memref<24x128xf32, #tpu.memory_space<vmem>>, vector<16x2xf32>
    tpu.vector_store %arg2[%c8_59, %c0_60], %91 {strides = array<i32>} : memref<24x128xf32, #tpu.memory_space<vmem>>, vector<16x2xf32>,
    return
  }
}

</mosaic_0001>

<bundles_post_ra>
// kernel: _lambda_.1
= control target key start
LH: loop header
LB: loop body
LE: loop exit
PB: predicated region body
PF: predicated region fallthrough
CT: control target
= control target key end

     0   :  { %v1302_v1 = vmov 0.0   ;;  %vm1303_vm0 = vmmov 0   ;;  %s1304_s11 = smov 32   ;;  %s1305_s16 = smov 16   ;;  %vm37_vm1 = vcmask 1045504   ;;  %vm27_vm2 = vcmask 48128   ;;  %s1477_s1 = inlined_call_operand.vmem [shape: f32[24,128], index: 1, kind: input, shape index: {}]   ;;  %s1478_s0 = inlined_call_operand.vmem [shape: f32[48,128], index: 0, kind: input, shape index: {}]   ;;  %s1479_s2 = inlined_call_operand.vmem [shape: f32[24,128], index: 2, kind: output, shape index: {}]  }
   0x1   :  { %v14_v0 = vld [vmem:[%s1477_s1] sm:$0x3f]  ;;  %1162 = vmatprep.subr.mxu0 %v1302_v1  ;;  %1164 = vmatprep.mubr.msk.f32.mxu0 %vm1303_vm0, %v1302_v1  ;;  %v1340_v3 = vld [vmem:[%s1477_s1 + $0x8] ss:$0 sm:$0xff]  ;;  %s1306_s17 = smov 80   ;;  %vm155_vm3 = vcmask 1043456   ;;  %1073 = vst [vmem:[%s1479_s2] sm:$0xff] %v1302_v1 }
   0x2   :  { %21 = vrot.lane.b32.xlu0 %v14_v0, %s1304_s11  ;;  %v138_v2 = vld [vmem:[%s1477_s1] sm:$0xf]  ;;  %1173 = vmatprep.subr.mxu1 %v1302_v1  ;;  %v12_v6 = vld [vmem:[%s1478_s0 + $0x8] sm:$0xff]  ;;  %v13_v7 = vld [vmem:[%s1478_s0 + $0x10] sm:$0xf]  ;;  %s1307_s26 = smov 64  }
   0x3   :  { %140 = vrot.lane.b32.xlu1 %v138_v2, %s1305_s16  ;;  %1175 = vmatprep.mubr.msk.f32.mxu1 %vm1303_vm0, %v1302_v1  ;;  %v11_v4 = vld [vmem:[%s1478_s0] sm:$0xff]  ;;  %v1368_v9 = vld [vmem:[%s1477_s1 + $0x8] sm:$0xf]  ;;  %s1308_s27 = smov 112   ;;  %vm145_vm4 = vcmask 31744   ;;  %s1309_s28 = smov 48  }
   0x4   :  { %v432_v55 = vld [vmem:[%s1477_s1] sm:$0xff]  ;;  %s1310_s3 = smov 96   ;;  %vm355_vm5 = vcmask 162816   ;;  %vm440_vm6 = vcmask 64512   ;;  %1074 = vst [vmem:[%s1479_s2 + $0x8] sm:$0xff] %v1302_v1  ;;  %1075 = vst [vmem:[%s1479_s2 + $0x10] sm:$0xff] %v1302_v1 }
   0x5   :  { %vm1076_vm7 = vcmask 123904   ;;  %vm605_vm8 = vcmask 130048   ;;  %vm1079_vm9 = vcmask 15360  }
   0x6   :  { %24 = vrot.lane.b32.xlu0 %v1340_v3, %s1306_s17 }
   0x7   :  { %142 = vrot.lane.b32.xlu1 %v1340_v3, %s1307_s26 }
   0xa   :  { %258 = vrot.lane.b32.xlu0 %v1368_v9, %s1308_s27 }
   0xb   :  { %260 = vrot.lane.b32.xlu1 %v1340_v3, %s1309_s28 }
   0xe   :  { %434 = vrot.lane.b32.xlu0 %v432_v55, %s1308_s27 }
   0xf   :  { %514 = vrot.lane.b32.xlu1 %v432_v55, %s1310_s3 }
  0x12   :  { %517 = vrot.lane.b32.xlu0 %v1340_v3, %s1305_s16 }
  0x13   :  { %437 = vrot.lane.b32.xlu1 %v1340_v3, %s1304_s11  ;;  %v354_v3 = vld [vmem:[%s1478_s0 + $0x18] sm:$0x3] }
  0x16   :  { %683 = vrot.lane.b32.xlu0 %v1368_v9, %s1310_s3 }
  0x17   :  { %787 = vrot.lane.b32.xlu1 %v432_v55, %s1306_s17 }
  0x1b   :  { %887 = vrot.lane.b32.xlu1 %v432_v55, %s1307_s26 }
  0x1f   :  { %986 = vrot.lane.b32.xlu1 %v432_v55, %s1309_s28 }
  0x74   :  { %v22_v5 = vpop.permute.xlu0 %21 }
  0x75   :  { %1163 = vmatpush3.msk.msra.mxu0 %vm37_vm1, %v22_v5  ;;  %v141_v8 = vpop.permute.xlu1 %140 }
  0x76   :  { %1165 = vmatmul.mubr.msk.f32.vlgmr.msra.gmra.mxu0 %vm27_vm2, %v11_v4  ;;  %1184 = vmatprep.subr.mxu0 %v1302_v1 }
  0x77   :  { %1167 = vmatprep.mubr.msk.f32.mxu0 %vm1303_vm0, %v1302_v1  ;;  %1174 = vmatpush3.msk.msra.mxu1 %vm155_vm3, %v141_v8 }
  0x78   :  { %1195 = vmatprep.subr.mxu1 %v1302_v1  ;;  %v25_v10 = vpop.permute.xlu0 %24 }
  0x79   :  { %v143_v33 = vpop.permute.xlu1 %142 }
  0x7a   :  { %1168 = vmatmul.mubr.msk.f32.gmra.mxu0 %vm27_vm2, %v12_v6 }
  0x7b   :  { %1170 = vmatprep.mubr.msk.f32.mxu0 %vm1303_vm0, %v1302_v1 }
  0x7c   :  { %v259_v32 = vpop.permute.xlu0 %258 }
  0x7d   :  { %1185 = vmatpush3.msk.msra.mxu0 %vm155_vm3, %v259_v32  ;;  %v261_v60 = vpop.permute.xlu1 %260 }
  0x7e   :  { %1171 = vmatmul.mubr.msk.f32.gmra.mxu0 %vm27_vm2, %v13_v7  ;;  %1214 = vmatprep.subr.mxu0 %v1302_v1 }
  0x7f   :  { %1186 = vmatprep.mubr.msk.f32.mxu0 %vm1303_vm0, %v1302_v1 }
  0x80   :  { %v435_v4 = vpop.permute.xlu0 %434 }
  0x81   :  { %v515_v5 = vpop.permute.xlu1 %514 }
  0x84   :  { %v518_v8 = vpop.permute.xlu0 %517 }
  0x88   :  { %v684_v9 = vpop.permute.xlu0 %683 }
 0x136   :  { %v106_v11 = vpop.f32.mrf.mxu0 }
 0x137   :  { %v107_v12 = vadd.f32 %v106_v11, %v25_v10  ;;  %v601_v11 = vld [vmem:[%s1478_s0 + $0x20] sm:$0xff] }
 0x138   :  { %v1166_v13 = vpop.f32.mrf.mxu0 }
 0x139   :  { %v1091_v14 = vmul.f32 -1.442695, %v107_v12  ;;  %v602_v12 = vld [vmem:[%s1478_s0 + $0x28] sm:$0xff]  ;;  %v438_v13 = vpop.permute.xlu1 %437 }
 0x13a   :  { %v111_v15 = vpop.f32.mrf.mxu0 }
 0x13b   :  { %1250 = vpow2.f32 %v1091_v14  ;;  %v112_v16 = vadd.f32 %v111_v15, %v25_v10 }
 0x13c   :  { %v1169_v17 = vpop.f32.mrf.mxu0 }
 0x13d   :  { %v1092_v18 = vmul.f32 -1.442695, %v112_v16 }
 0x13e   :  { %v116_v19 = vpop.f32.mrf.mxu0 }
 0x13f   :  { %1252 = vpow2.f32 %v1092_v18  ;;  %v117_v20 = vadd.f32 %v116_v19, %v25_v10  ;;  %v604_v10 = vld [vmem:[%s1477_s1 + $0x8] sm:$0xff] }
 0x140   :  { %v1172_v21 = vpop.f32.mrf.mxu0 }
 0x141   :  { %v1093_v22 = vmul.f32 -1.442695, %v117_v20 }
 0x143   :  { %1254 = vpow2.f32 %v1093_v22 }
 0x148   :  { %v1251_v23 = vpop.eup %1250 }
 0x149   :  { %v129_v24 = vadd.f32 1.0, %v1251_v23 }
 0x14b   :  { %1256 = vrcp.f32 %v129_v24  ;;  %v590_v24 = vld [vmem:[%s1478_s0 + $0x1a] sm:$0x1] }
 0x14c   :  { %v1253_v25 = vpop.eup %1252 }
 0x14d   :  { %v130_v26 = vadd.f32 1.0, %v1253_v25 }
 0x14f   :  { %1258 = vrcp.f32 %v130_v26 }
 0x150   :  { %v1255_v27 = vpop.eup %1254 }
 0x151   :  { %v131_v28 = vadd.f32 1.0, %v1255_v27 }
 0x153   :  { %1260 = vrcp.f32 %v131_v28  ;;  %v1114_v28 = vld [vmem:[%s1477_s1 + $0x10] ss:$0 sm:$0xff] }
 0x154   :  { %791 = vrot.lane.b32.xlu0 %v1114_v28, %s1308_s27 }
 0x158   :  { %v1257_v29 = vpop.eup %1256  ;;  %890 = vrot.lane.b32.xlu0 %v1114_v28, %s1310_s3 }
 0x159   :  { %1176 = vmatmul.mubr.msk.f32.vlgmr.msra.gmra.mxu1 %vm145_vm4, %v1257_v29  ;;  %v788_v29 = vpop.permute.xlu1 %787 }
 0x15a   :  { %1178 = vmatprep.mubr.msk.f32.mxu1 %vm1303_vm0, %v1302_v1 }
 0x15c   :  { %v1259_v30 = vpop.eup %1258  ;;  %989 = vrot.lane.b32.xlu0 %v1114_v28, %s1306_s17 }
 0x15d   :  { %1179 = vmatmul.mubr.msk.f32.gmra.mxu1 %vm145_vm4, %v1259_v30  ;;  %v679_v30 = vlaneseq }
 0x15e   :  { %1181 = vmatprep.mubr.msk.f32.mxu1 %vm1303_vm0, %v1302_v1 }
 0x160   :  { %v1261_v31 = vpop.eup %1260 }
 0x161   :  { %1182 = vmatmul.mubr.msk.f32.gmra.mxu1 %vm145_vm4, %v1261_v31  ;;  %v680_v31 = vshrl.u32 %v679_v30, 7 }
 0x162   :  { %1201 = vmatprep.mubr.msk.f32.mxu1 %vm1303_vm0, %v1302_v1 }
 0x163   :  { %v681_v32 = vsub.s32 0, %v680_v31 }
 0x219   :  { %v224_v34 = vpop.f32.mrf.mxu1 }
 0x21a   :  { %v225_v35 = vadd.f32 %v224_v34, %v143_v33 }
 0x21b   :  { %v1177_v36 = vpop.f32.mrf.mxu1 }
 0x21c   :  { %v1098_v37 = vmul.f32 -1.442695, %v225_v35 }
 0x21d   :  { %v229_v38 = vpop.f32.mrf.mxu1 }
 0x21e   :  { %1262 = vpow2.f32 %v1098_v37  ;;  %v230_v39 = vadd.f32 %v229_v38, %v143_v33 }
 0x21f   :  { %v1180_v40 = vpop.f32.mrf.mxu1 }
 0x220   :  { %v1099_v41 = vmul.f32 -1.442695, %v230_v39 }
 0x221   :  { %v234_v42 = vpop.f32.mrf.mxu1 }
 0x222   :  { %1264 = vpow2.f32 %v1099_v41  ;;  %v235_v43 = vadd.f32 %v234_v42, %v143_v33 }
 0x223   :  { %v1183_v44 = vpop.f32.mrf.mxu1 }
 0x224   :  { %v1100_v45 = vmul.f32 -1.442695, %v235_v43 }
 0x226   :  { %1266 = vpow2.f32 %v1100_v45 }
 0x22b   :  { %v1263_v46 = vpop.eup %1262 }
 0x22c   :  { %v247_v47 = vadd.f32 1.0, %v1263_v46 }
 0x22e   :  { %1268 = vrcp.f32 %v247_v47 }
 0x22f   :  { %v1265_v48 = vpop.eup %1264 }
 0x230   :  { %v248_v49 = vadd.f32 1.0, %v1265_v48 }
 0x232   :  { %1270 = vrcp.f32 %v248_v49 }
 0x233   :  { %v1267_v50 = vpop.eup %1266 }
 0x234   :  { %v249_v51 = vadd.f32 1.0, %v1267_v50  ;;  %v888_v50 = vpop.permute.xlu1 %887 }
 0x236   :  { %1272 = vrcp.f32 %v249_v51  ;;  %v792_v51 = vpop.permute.xlu0 %791 }
 0x23b   :  { %v1269_v52 = vpop.eup %1268 }
 0x23c   :  { %1187 = vmatmul.mubr.msk.f32.vlgmr.msra.gmra.mxu0 %vm145_vm4, %v1269_v52 }
 0x23d   :  { %1189 = vmatprep.mubr.msk.f32.mxu0 %vm1303_vm0, %v1302_v1  ;;  %1215 = vmatpush3.msra.mxu0 %v604_v10 }
 0x23e   :  { %1216 = vmatprep.subr.mxu0 %v1302_v1 }
 0x23f   :  { %v1271_v53 = vpop.eup %1270  ;;  %1217 = vmatpush3.msra.mxu0 %v432_v55 }
 0x240   :  { %1190 = vmatmul.mubr.msk.f32.gmra.mxu0 %vm145_vm4, %v1271_v53  ;;  %1226 = vmatprep.subr.mxu0 %v788_v29 }
 0x241   :  { %1192 = vmatprep.mubr.msk.f32.mxu0 %vm1303_vm0, %v1302_v1 }
 0x243   :  { %v1273_v54 = vpop.eup %1272 }
 0x244   :  { %1193 = vmatmul.mubr.msk.f32.gmra.mxu0 %vm145_vm4, %v1273_v54 }
 0x245   :  { %1218 = vmatprep.mubr.msk.f32.mxu0 %vm1303_vm0, %v1302_v1 }
 0x2fc   :  { %v340_v56 = vpop.f32.mrf.mxu0 }
 0x2fd   :  { %v341_v2 = vadd.f32 %v340_v56, %v261_v60 }
 0x2fe   :  { %v1188_v57 = vpop.f32.mrf.mxu0 }
 0x300   :  { %v345_v58 = vpop.f32.mrf.mxu0 }
 0x301   :  { %v346_v0 = vadd.f32 %v345_v58, %v261_v60 }
 0x302   :  { %v1191_v59 = vpop.f32.mrf.mxu0 }
 0x304   :  { %v350_v61 = vpop.f32.mrf.mxu0 }
 0x305   :  { %v351_v62 = vadd.f32 %v350_v61, %v261_v60 }
 0x306   :  { %v1194_v63 = vpop.f32.mrf.mxu0 }
 0x307   :  { %1196 = vmatpush3.msk.msra.mxu1 %vm155_vm3, %v351_v62 }
 0x308   :  { %1197 = vmatprep.subr.mxu1 %v1302_v1 }
 0x309   :  { %1198 = vmatpush3.msra.mxu1 %v346_v0  ;;  %v987_v0 = vpop.permute.xlu1 %986 }
 0x30a   :  { %1199 = vmatprep.subr.mxu1 %v1302_v1 }
 0x30b   :  { %1200 = vmatpush3.msra.mxu1 %v341_v2  ;;  %v891_v2 = vpop.permute.xlu0 %890 }
 0x30c   :  { %1202 = vmatmul.mubr.msk.f32.vlgmr.msra.gmra.mxu1 %vm355_vm5, %v354_v3  ;;  %1204 = vmatprep.subr.mxu1 %v1302_v1 }
 0x30d   :  { %1205 = vmatpush3.msra.mxu1 %v435_v4  ;;  %1206 = vmatprep.mubr.msk.f32.mxu1 %vm1303_vm0, %v1302_v1 }
 0x30e   :  { %1209 = vmatprep.subr.mxu1 %v1302_v1 }
 0x3cc   :  { %v428_v6 = vpop.f32.mrf.mxu1 }
 0x3cd   :  { %1207 = vmatmul.mubr.msk.f32.vlgmr.msra.gmra.mxu1 %vm440_vm6, %v428_v6 }
 0x3ce   :  { %1210 = vmatpush3.msra.mxu1 %v515_v5  ;;  %1211 = vmatprep.mubr.msk.f32.mxu1 %vm1303_vm0, %v1302_v1  ;;  %v1203_v7 = vpop.f32.mrf.mxu1 }
 0x3cf   :  { %1221 = vmatprep.subr.msk.mxu1 %vm155_vm3, %v684_v9 }
 0x3d1   :  { %1212 = vmatmul.mubr.msk.f32.vlgmr.msra.gmra.mxu1 %vm440_vm6, %v428_v6 }
 0x3d2   :  { %1222 = vmatpush3.msk.msra.mxu1 %vm155_vm3, %v684_v9  ;;  %1223 = vmatprep.mubr.msk.f32.mxu1 %vm145_vm4, %v601_v11 }
 0x3d3   :  { %1231 = vmatprep.subr.mxu1 %v888_v50 }
 0x3d5   :  { %1224 = vmatmul.mubr.msk.f32.vlgmr.msra.gmra.mxu1 %vm145_vm4, %v602_v12 }
 0x3d6   :  { %1232 = vmatpush3.msra.mxu1 %v888_v50 }
 0x48d   :  { %v510_v14 = vpop.f32.mrf.mxu1 }
 0x48e   :  { %v511_v15 = vadd.f32 %v510_v14, %v438_v13 }
 0x48f   :  { %v1208_v16 = vpop.f32.mrf.mxu1 }
 0x490   :  { %1077 = vst.msk [vmem:[%s1479_s2] sm:$0x3] %vm1076_vm7, %v511_v15 }
 0x491   :  { %v586_v17 = vpop.f32.mrf.mxu1 }
 0x492   :  { %v587_v18 = vadd.f32 %v586_v17, %v518_v8 }
 0x493   :  { %v1213_v19 = vpop.f32.mrf.mxu1 }
 0x494   :  { %v1109_v20 = vmul.f32 -1.442695, %v587_v18  ;;  %1078 = vst.msk [vmem:[%s1479_s2 + $0x2] sm:$0x3] %vm1076_vm7, %v587_v18 }
 0x495   :  { %v1225_v33 = vpop.f32.mrf.mxu1 }
 0x496   :  { %1274 = vpow2.f32 %v1109_v20 }
 0x497   :  { %v759_v37 = vpop.f32.mrf.mxu1 }
 0x4a3   :  { %v1275_v1 = vpop.eup %1274 }
 0x4a4   :  { %v594_v21 = vadd.f32 1.0, %v1275_v1 }
 0x4a6   :  { %1276 = vrcp.f32 %v594_v21 }
 0x4b3   :  { %v1277_v22 = vpop.eup %1276 }
 0x4b4   :  { %v597_v23 = vmul.f32 0.9, %v1277_v22 }
 0x4b6   :  { %v598_v25 = vadd.f32 0.1, %v597_v23 }
 0x4b8   :  { %v599_v26 = vmul.f32 %v598_v25, %v590_v24 }
 0x4ba   :  { %v600_v27 = vadd.f32 %v599_v26, %v511_v15  ;;  %v990_v15 = vpop.permute.xlu0 %989 }
 0x4bc   :  { %1219 = vmatmul.mubr.msk.f32.vlgmr.msra.gmra.mxu0 %vm605_vm8, %v600_v27 }
 0x4bd   :  { %1227 = vmatpush3.msra.mxu0 %v788_v29 }
 0x4be   :  { %1236 = vmatprep.subr.mxu0 %v987_v0 }
 0x57c   :  { %v675_v34 = vpop.f32.mrf.mxu0 }
 0x57d   :  { %v682_v35 = vrot.slane %v675_v34, %v681_v32 }
 0x57e   :  { %v1220_v36 = vpop.f32.mrf.mxu0 }
 0x57f   :  { %v765_v38 = vadd.f32 %v1225_v33, %v682_v35  ;;  %v760_v39 = vadd.f32 %v759_v37, %v682_v35 }
 0x581   :  { %v774_v40 = vadd.f32 %v1114_v28, %v765_v38  ;;  %v773_v41 = vadd.f32 %v1114_v28, %v760_v39 }
 0x583   :  { %v1116_v42 = vmul.f32 -1.442695, %v774_v40  ;;  %v1115_v43 = vmul.f32 -1.442695, %v773_v41 }
 0x585   :  { %1278 = vpow2.f32 %v1116_v42 }
 0x586   :  { %1280 = vpow2.f32 %v1115_v43 }
 0x592   :  { %v1279_v44 = vpop.eup %1278 }
 0x593   :  { %v1281_v45 = vpop.eup %1280  ;;  %v782_v46 = vadd.f32 1.0, %v1279_v44 }
 0x594   :  { %v781_v47 = vadd.f32 1.0, %v1281_v45 }
 0x595   :  { %1282 = vrcp.f32 %v782_v46 }
 0x596   :  { %1284 = vrcp.f32 %v781_v47 }
 0x5a2   :  { %v1283_v48 = vpop.eup %1282 }
 0x5a3   :  { %v1285_v49 = vpop.eup %1284 }
 0x5a4   :  { %1228 = vmatprep.mubr.msk.f32.mxu0 %vm440_vm6, %v1285_v49 }
 0x5a5   :  { %1229 = vmatmul.mubr.msk.f32.vlgmr.msra.gmra.mxu0 %vm440_vm6, %v1283_v48 }
 0x5a6   :  { %1237 = vmatpush3.msra.mxu0 %v987_v0 }
 0x665   :  { %v1230_v52 = vpop.f32.mrf.mxu0 }
 0x666   :  { %v872_v53 = vadd.f32 %v1230_v52, %v792_v51 }
 0x667   :  { %v866_v54 = vpop.f32.mrf.mxu0 }
 0x668   :  { %v1120_v55 = vmul.f32 -1.442695, %v872_v53  ;;  %v867_v56 = vadd.f32 %v866_v54, %v792_v51 }
 0x66a   :  { %1286 = vpow2.f32 %v1120_v55  ;;  %v1119_v57 = vmul.f32 -1.442695, %v867_v56 }
 0x66c   :  { %1288 = vpow2.f32 %v1119_v57 }
 0x677   :  { %v1287_v58 = vpop.eup %1286 }
 0x678   :  { %v882_v60 = vadd.f32 1.0, %v1287_v58 }
 0x679   :  { %v1289_v59 = vpop.eup %1288 }
 0x67a   :  { %v881_v61 = vadd.f32 1.0, %v1289_v59 }
 0x67c   :  { %1290 = vrcp.f32 %v881_v61 }
 0x67d   :  { %1292 = vrcp.f32 %v882_v60 }
 0x689   :  { %v1291_v62 = vpop.eup %1290 }
 0x68a   :  { %v1293_v63 = vpop.eup %1292  ;;  %1233 = vmatprep.mubr.msk.f32.mxu1 %vm440_vm6, %v1291_v62 }
 0x68b   :  { %1234 = vmatmul.mubr.msk.f32.vlgmr.msra.gmra.mxu1 %vm440_vm6, %v1293_v63 }
 0x74b   :  { %v1235_v3 = vpop.f32.mrf.mxu1 }
 0x74c   :  { %v971_v4 = vadd.f32 %v1235_v3, %v891_v2 }
 0x74d   :  { %v965_v5 = vpop.f32.mrf.mxu1 }
 0x74e   :  { %v1124_v6 = vmul.f32 -1.442695, %v971_v4  ;;  %v966_v7 = vadd.f32 %v965_v5, %v891_v2 }
 0x750   :  { %1294 = vpow2.f32 %v1124_v6  ;;  %v1123_v8 = vmul.f32 -1.442695, %v966_v7 }
 0x752   :  { %1296 = vpow2.f32 %v1123_v8 }
 0x75d   :  { %v1295_v9 = vpop.eup %1294 }
 0x75e   :  { %v981_v11 = vadd.f32 1.0, %v1295_v9 }
 0x75f   :  { %v1297_v10 = vpop.eup %1296 }
 0x760   :  { %v980_v12 = vadd.f32 1.0, %v1297_v10 }
 0x762   :  { %1298 = vrcp.f32 %v980_v12 }
 0x763   :  { %1300 = vrcp.f32 %v981_v11 }
 0x76f   :  { %v1299_v13 = vpop.eup %1298 }
 0x770   :  { %v1301_v14 = vpop.eup %1300  ;;  %1238 = vmatprep.mubr.msk.f32.mxu0 %vm440_vm6, %v1299_v13 }
 0x771   :  { %1239 = vmatmul.mubr.msk.f32.vlgmr.msra.gmra.mxu0 %vm440_vm6, %v1301_v14 }
 0x831   :  { %v1240_v16 = vpop.f32.mrf.mxu0 }
 0x832   :  { %v1070_v17 = vadd.f32 %v1240_v16, %v990_v15 }
 0x833   :  { %v1064_v18 = vpop.f32.mrf.mxu0 }
 0x834   :  { %1081 = vst.msk [vmem:[%s1479_s2 + $0x10] sm:$0xff] %vm1079_vm9, %v1070_v17  ;;  %v1065_v19 = vadd.f32 %v1064_v18, %v990_v15 }
 0x836   :  { %1080 = vst.msk [vmem:[%s1479_s2 + $0x8] sm:$0xff] %vm1079_vm9, %v1065_v19 }

</bundles_post_ra>
